<compile_context>
chip_gen: v5e
topology: v5e:2x2
jax: 0.10.0
libtpu: 0.0.40
codegen_flags: <defaults>
</compile_context>

<pallas_src>
import functools

import jax
import jax.numpy as jnp
from jax.experimental import pallas as pl
from jax.experimental.pallas import tpu as pltpu


# --------------------------------------------------------------------------
# Kernels
# --------------------------------------------------------------------------

def _mlp_gate(pooled, w1_ref, b1_ref, w2_ref, b2_ref):
    """pooled: (C, 2) f32 columns [avg, max] -> sigmoid gate (C, 1) f32."""
    w1 = w1_ref[...].astype(jnp.float32)            # (Cr, C)
    w2 = w2_ref[...].astype(jnp.float32)            # (C, Cr)
    b1 = b1_ref[...].astype(jnp.float32)            # (Cr, 1)
    b2 = b2_ref[...].astype(jnp.float32)            # (C, 1)
    h = jnp.dot(w1, pooled, preferred_element_type=jnp.float32) + b1   # (Cr, 2)
    h = jnp.maximum(h, 0.0)                                            # ReLU
    att = jnp.dot(w2, h, preferred_element_type=jnp.float32) + b2      # (C, 2)
    att = jnp.sum(att, axis=1, keepdims=True)       # avg-branch + max-branch
    return jax.nn.sigmoid(att)                      # (C, 1) f32


def _fused_kernel(x_ref, w1_ref, b1_ref, w2_ref, b2_ref, o_ref, *, inv_hw):
    # x_ref/o_ref: (BB, C, HW); weights in PyTorch layout.
    bb_block = x_ref.shape[0]
    for bb in range(bb_block):                       # static unroll, BB <= 8
        x2 = x_ref[bb]                               # (C, HW), native dtype
        # Channel-column pooling (C stays on sublanes -> no transposes).
        # Per-tile reduction in native dtype; only tiny pooled vectors go f32.
        sum_c = jnp.sum(x2, axis=-1, keepdims=True).astype(jnp.float32)  # (C,1)
        max_c = jnp.max(x2, axis=-1, keepdims=True).astype(jnp.float32)  # (C,1)
        pooled = jnp.concatenate([sum_c * inv_hw, max_c], axis=1)        # (C,2)
        scale = _mlp_gate(pooled, w1_ref, b1_ref, w2_ref, b2_ref)        # (C,1)
        o_ref[bb] = x2 * scale.astype(x2.dtype)      # lane broadcast multiply


def _reduce_gate_kernel(x_ref, w1_ref, b1_ref, w2_ref, b2_ref, scale_ref,
                        acc_sum, acc_max, *, inv_hw):
    # grid = (B, K): b parallel, k = spatial reduction axis ("arbitrary").
    k = pl.program_id(1)

    @pl.when(k == 0)
    def _init():
        acc_sum[...] = jnp.zeros_like(acc_sum)
        acc_max[...] = jnp.full_like(acc_max, -jnp.inf)   # max accumulator: -inf

    x2 = x_ref[0]                                          # (C, T)
    acc_sum[...] += jnp.sum(x2, axis=-1, keepdims=True).astype(jnp.float32)
    acc_max[...] = jnp.maximum(
        acc_max[...], jnp.max(x2, axis=-1, keepdims=True).astype(jnp.float32))

    # MLP + sigmoid hoisted out of the per-tile path: once per batch row.
    @pl.when(k == pl.num_programs(1) - 1)
    def _finalize():
        pooled = jnp.concatenate([acc_sum[...] * inv_hw, acc_max[...]], axis=1)
        scale = _mlp_gate(pooled, w1_ref, b1_ref, w2_ref, b2_ref)      # (C, 1)
        scale_ref[...] = scale[None]                                    # (1, C, 1)


def _rescale_kernel(x_ref, scale_ref, o_ref):
    # x_ref/o_ref: (1, C, T); scale_ref: (1, C, 1) f32. Pure VPU + DMA.
    x = x_ref[...]
    o_ref[...] = x * scale_ref[...].astype(x.dtype)


# --------------------------------------------------------------------------
# Wrapper
# --------------------------------------------------------------------------

def _pick_spatial_tile(hw, c, itemsize, budget_bytes):
    """Largest lane-dense tile (multiple of 128) dividing hw within budget."""
    if c * hw * itemsize <= budget_bytes:
        return hw
    if hw % 128 != 0:
        # TODO(synk): pad/mask ragged spatial sizes instead of full-row blocks.
        return hw
    max_elems = max(128, (budget_bytes // (c * itemsize)) // 128 * 128)
    t = min(max_elems, hw)
    t = (t // 128) * 128
    while t > 128:
        if hw % t == 0:
            return t
        t -= 128
    return 128


def _pick_batch_block(batch, per_batch_bytes, budget_bytes, cap=8):
    """Largest divisor of `batch` (<= cap) whose block fits the budget."""
    for d in range(min(batch, cap), 0, -1):
        if batch % d == 0 and d * per_batch_bytes <= budget_bytes:
            return d
    return 1


def channel_gate(x_nchw, w1, b1, w2, b2, *, block_bytes=4 * 1024 * 1024):
    """ChannelGate forward (pool_types=['avg','max']).

    x_nchw: (B, C, H, W).
    Weights in PyTorch nn.Linear layout (consumed directly, no transpose):
      w1: (Cr, C), b1: (Cr,), w2: (C, Cr), b2: (C,)  with Cr = C // reduction.
    """
    B, C, H, W = x_nchw.shape
    HW = H * W
    x = x_nchw.reshape(B, C, HW)
    itemsize = x.dtype.itemsize
    Cr = w1.shape[0]
    b1c = b1.reshape(Cr, 1)
    b2c = b2.reshape(C, 1)

    vmem_kw = dict(vmem_limit_bytes=32 * 1024 * 1024)

    def weight_specs(idx_map):
        # Constant-index blocks: params stay VMEM-resident across the grid.
        return [pl.BlockSpec((Cr, C), idx_map),
                pl.BlockSpec((Cr, 1), idx_map),
                pl.BlockSpec((C, Cr), idx_map),
                pl.BlockSpec((C, 1), idx_map)]

    per_batch_bytes = C * HW * itemsize
    if per_batch_bytes <= block_bytes:
        # Fused single pass: one read + one write of x.  Pack multiple batch
        # rows per block to amortize per-grid-step overhead for small maps.
        BB = _pick_batch_block(B, per_batch_bytes, block_bytes)
        out = pl.pallas_call(
            functools.partial(_fused_kernel, inv_hw=1.0 / HW),
            out_shape=jax.ShapeDtypeStruct((B, C, HW), x.dtype),
            grid=(B // BB,),
            in_specs=[pl.BlockSpec((BB, C, HW), lambda b: (b, 0, 0))]
                     + weight_specs(lambda b: (0, 0)),
            out_specs=pl.BlockSpec((BB, C, HW), lambda b: (b, 0, 0)),
            compiler_params=pltpu.CompilerParams(
                dimension_semantics=("parallel",), **vmem_kw),
        )(x, w1, b1c, w2, b2c)
    else:
        T = _pick_spatial_tile(HW, C, itemsize, block_bytes)
        K = HW // T
        # Pass 1: spatial reduction + gate -> (B, C, 1) f32 scale.
        scale = pl.pallas_call(
            functools.partial(_reduce_gate_kernel, inv_hw=1.0 / HW),
            out_shape=jax.ShapeDtypeStruct((B, C, 1), jnp.float32),
            grid=(B, K),
            in_specs=[pl.BlockSpec((1, C, T), lambda b, k: (b, 0, k))]
                     + weight_specs(lambda b, k: (0, 0)),
            out_specs=pl.BlockSpec((1, C, 1), lambda b, k: (b, 0, 0)),
            scratch_shapes=[pltpu.VMEM((C, 1), jnp.float32),   # acc_sum
                            pltpu.VMEM((C, 1), jnp.float32)],  # acc_max
            compiler_params=pltpu.CompilerParams(
                dimension_semantics=("parallel", "arbitrary"), **vmem_kw),
        )(x, w1, b1c, w2, b2c)
        # Pass 2: channel-wise rescale, fully parallel lane-dense tiles.
        out = pl.pallas_call(
            _rescale_kernel,
            out_shape=jax.ShapeDtypeStruct((B, C, HW), x.dtype),
            grid=(B, K),
            in_specs=[pl.BlockSpec((1, C, T), lambda b, k: (b, 0, k)),
                      pl.BlockSpec((1, C, 1), lambda b, k: (b, 0, 0))],
            out_specs=pl.BlockSpec((1, C, T), lambda b, k: (b, 0, k)),
            compiler_params=pltpu.CompilerParams(
                dimension_semantics=("parallel", "parallel"), **vmem_kw),
        )(x, scale)

    return out.reshape(B, C, H, W)


# --------------------------------------------------------------------------
# Pure-JAX reference (matches the PyTorch forward)
# --------------------------------------------------------------------------

def reference_channel_gate(x, w1, b1, w2, b2):
    avg_pool = jnp.mean(x, axis=(2, 3))   # (B, C)
    max_pool = jnp.max(x, axis=(2, 3))    # (B, C)

    def mlp(v):
        h = jnp.maximum(v @ w1.T + b1, 0.0)
        return h @ w2.T + b2

    att = mlp(avg_pool) + mlp(max_pool)
    scale = jax.nn.sigmoid(att)[:, :, None, None]
    return x * scale


if __name__ == "__main__":
    reduction_ratio = 16
    key = jax.random.PRNGKey(0)

    def run_case(B, C, H, W, block_bytes):
        Cr = C // reduction_ratio
        kx, kw1, kb1, kw2, kb2 = jax.random.split(jax.random.fold_in(key, H), 5)
        x = jax.random.normal(kx, (B, C, H, W), dtype=jnp.float32)
        w1 = jax.random.normal(kw1, (Cr, C), dtype=jnp.float32) * 0.1
        b1 = jax.random.normal(kb1, (Cr,), dtype=jnp.float32) * 0.1
        w2 = jax.random.normal(kw2, (C, Cr), dtype=jnp.float32) * 0.1
        b2 = jax.random.normal(kb2, (C,), dtype=jnp.float32) * 0.1

        out = jax.block_until_ready(
            channel_gate(x, w1, b1, w2, b2, block_bytes=block_bytes))
        ref = reference_channel_gate(x, w1, b1, w2, b2)
        assert out.shape == x.shape
        err = float(jnp.max(jnp.abs(out - ref)))
        assert jnp.allclose(out, ref, atol=2e-5, rtol=1e-5), err

    # Small feature map -> fused single-pass path (2 batch rows per block).
    run_case(B=2, C=32, H=16, W=16, block_bytes=4 * 1024 * 1024)
    # Larger spatial with a tiny block budget -> exercises the two-pass
    # spatially-tiled path (T=256 lanes, K=4 reduction tiles).
    run_case(B=2, C=32, H=32, W=32, block_bytes=32 * 1024)

    print("KERNEL_OK")
</pallas_src>

<mosaic_0001>
module attributes {stable_mosaic.version = 11 : i64} {
  func.func @_fused_kernel(%arg0: i32, %arg1: memref<2x32x256xf32, #tpu.memory_space<vmem>>, %arg2: memref<2x32xf32, #tpu.memory_space<vmem>>, %arg3: memref<2x1xf32, #tpu.memory_space<vmem>>, %arg4: memref<32x2xf32, #tpu.memory_space<vmem>>, %arg5: memref<32x1xf32, #tpu.memory_space<vmem>>, %arg6: memref<2x32x256xf32, #tpu.memory_space<vmem>>) attributes {dimension_semantics = [#tpu.dimension_semantics<parallel>], iteration_bounds = array<i64: 1>, scalar_prefetch = 0 : i64, scratch_operands = 0 : i64, tpu.core_type = #tpu.core_type<tc>, window_params = [{transform_indices = @transform_0, window_bounds = array<i64: 2, 32, 256>}, {pipeline_mode = #tpu.pipeline_mode<synchronous>, transform_indices = @transform_1, window_bounds = array<i64: 2, 32>}, {pipeline_mode = #tpu.pipeline_mode<synchronous>, transform_indices = @transform_2, window_bounds = array<i64: 2, 1>}, {pipeline_mode = #tpu.pipeline_mode<synchronous>, transform_indices = @transform_3, window_bounds = array<i64: 32, 2>}, {pipeline_mode = #tpu.pipeline_mode<synchronous>, transform_indices = @transform_4, window_bounds = array<i64: 32, 1>}, {transform_indices = @transform_5, window_bounds = array<i64: 2, 32, 256>}]} {
    %c0 = arith.constant 0 : index
    %c0_0 = arith.constant 0 : index
    %c0_1 = arith.constant 0 : index
    %0 = vector.load %arg1[%c0, %c0_0, %c0_1] : memref<2x32x256xf32, #tpu.memory_space<vmem>>, vector<1x32x256xf32>
    %1 = vector.shape_cast %0 : vector<1x32x256xf32> to vector<32x256xf32>
    %cst = arith.constant dense<0.000000e+00> : vector<32xf32>
    %2 = vector.multi_reduction <add>, %1, %cst [1] : vector<32x256xf32> to vector<32xf32>
    %3 = vector.shape_cast %2 : vector<32xf32> to vector<32x1xf32>
    %cst_2 = arith.constant dense<0xFF800000> : vector<32xf32>
    %4 = vector.multi_reduction <maximumf>, %1, %cst_2 [1] : vector<32x256xf32> to vector<32xf32>
    %5 = vector.shape_cast %4 : vector<32xf32> to vector<32x1xf32>
    %cst_3 = arith.constant 3.906250e-03 : f32
    %6 = vector.broadcast %cst_3 : f32 to vector<32x1xf32>
    %7 = arith.mulf %3, %6 : vector<32x1xf32>
    %8 = tpu.concatenate %7, %5 in 1 : vector<32x1xf32>, vector<32x1xf32> -> vector<32x2xf32>
    %c0_4 = arith.constant 0 : index
    %c0_5 = arith.constant 0 : index
    %9 = vector.load %arg2[%c0_4, %c0_5] : memref<2x32xf32, #tpu.memory_space<vmem>>, vector<2x32xf32>
    %c0_6 = arith.constant 0 : index
    %c0_7 = arith.constant 0 : index
    %10 = vector.load %arg4[%c0_6, %c0_7] : memref<32x2xf32, #tpu.memory_space<vmem>>, vector<32x2xf32>
    %c0_8 = arith.constant 0 : index
    %c0_9 = arith.constant 0 : index
    %11 = vector.load %arg3[%c0_8, %c0_9] : memref<2x1xf32, #tpu.memory_space<vmem>>, vector<2x1xf32>
    %c0_10 = arith.constant 0 : index
    %c0_11 = arith.constant 0 : index
    %12 = vector.load %arg5[%c0_10, %c0_11] : memref<32x1xf32, #tpu.memory_space<vmem>>, vector<32x1xf32>
    %cst_12 = arith.constant dense<0.000000e+00> : vector<2x2xf32>
    %13 = tpu.matmul %9, %8, %cst_12 {dimension_numbers = #tpu.dot_dimension_numbers<[1], [0], [0], [1], [0, 0, 1, 1], [], []>} : vector<2x32xf32>, vector<32x2xf32>, vector<2x2xf32> -> vector<2x2xf32>
    %14 = vector.broadcast %11 : vector<2x1xf32> to vector<2x2xf32>
    %15 = arith.addf %13, %14 : vector<2x2xf32>
    %cst_13 = arith.constant 0.000000e+00 : f32
    %16 = vector.broadcast %cst_13 : f32 to vector<2x2xf32>
    %17 = arith.maximumf %15, %16 : vector<2x2xf32>
    %cst_14 = arith.constant dense<0.000000e+00> : vector<32x2xf32>
    %18 = tpu.matmul %10, %17, %cst_14 {dimension_numbers = #tpu.dot_dimension_numbers<[1], [0], [0], [1], [0, 0, 1, 1], [], []>} : vector<32x2xf32>, vector<2x2xf32>, vector<32x2xf32> -> vector<32x2xf32>
    %19 = vector.broadcast %12 : vector<32x1xf32> to vector<32x2xf32>
    %20 = arith.addf %18, %19 : vector<32x2xf32>
    %cst_15 = arith.constant dense<0.000000e+00> : vector<32xf32>
    %21 = vector.multi_reduction <add>, %20, %cst_15 [1] : vector<32x2xf32> to vector<32xf32>
    %22 = vector.shape_cast %21 : vector<32xf32> to vector<32x1xf32>
    %23 = arith.negf %22 : vector<32x1xf32>
    %24 = math.exp %23 : vector<32x1xf32>
    %cst_16 = arith.constant 1.000000e+00 : f32
    %25 = vector.broadcast %cst_16 : f32 to vector<32x1xf32>
    %26 = arith.addf %25, %24 : vector<32x1xf32>
    %27 = arith.divf %25, %26 : vector<32x1xf32>
    %28 = vector.broadcast %27 : vector<32x1xf32> to vector<32x256xf32>
    %29 = arith.mulf %1, %28 : vector<32x256xf32>
    %c0_17 = arith.constant 0 : index
    %c0_18 = arith.constant 0 : index
    %c0_19 = arith.constant 0 : index
    %30 = vector.load %arg6[%c0_17, %c0_18, %c0_19] : memref<2x32x256xf32, #tpu.memory_space<vmem>>, vector<1x32x256xf32>
    %31 = vector.shape_cast %30 : vector<1x32x256xf32> to vector<32x256xf32>
    %32 = vector.shape_cast %29 : vector<32x256xf32> to vector<1x32x256xf32>
    tpu.vector_store %arg6[%c0_17, %c0_18, %c0_19], %32 {strides = array<i32>} : memref<2x32x256xf32, #tpu.memory_space<vmem>>, vector<1x32x256xf32>,
    %c1 = arith.constant 1 : index
    %c0_20 = arith.constant 0 : index
    %c0_21 = arith.constant 0 : index
    %33 = vector.load %arg1[%c1, %c0_20, %c0_21] : memref<2x32x256xf32, #tpu.memory_space<vmem>>, vector<1x32x256xf32>
    %34 = vector.shape_cast %33 : vector<1x32x256xf32> to vector<32x256xf32>
    %cst_22 = arith.constant dense<0.000000e+00> : vector<32xf32>
    %35 = vector.multi_reduction <add>, %34, %cst_22 [1] : vector<32x256xf32> to vector<32xf32>
    %36 = vector.shape_cast %35 : vector<32xf32> to vector<32x1xf32>
    %cst_23 = arith.constant dense<0xFF800000> : vector<32xf32>
    %37 = vector.multi_reduction <maximumf>, %34, %cst_23 [1] : vector<32x256xf32> to vector<32xf32>
    %38 = vector.shape_cast %37 : vector<32xf32> to vector<32x1xf32>
    %cst_24 = arith.constant 3.906250e-03 : f32
    %39 = vector.broadcast %cst_24 : f32 to vector<32x1xf32>
    %40 = arith.mulf %36, %39 : vector<32x1xf32>
    %41 = tpu.concatenate %40, %38 in 1 : vector<32x1xf32>, vector<32x1xf32> -> vector<32x2xf32>
    %c0_25 = arith.constant 0 : index
    %c0_26 = arith.constant 0 : index
    %42 = vector.load %arg2[%c0_25, %c0_26] : memref<2x32xf32, #tpu.memory_space<vmem>>, vector<2x32xf32>
    %c0_27 = arith.constant 0 : index
    %c0_28 = arith.constant 0 : index
    %43 = vector.load %arg4[%c0_27, %c0_28] : memref<32x2xf32, #tpu.memory_space<vmem>>, vector<32x2xf32>
    %c0_29 = arith.constant 0 : index
    %c0_30 = arith.constant 0 : index
    %44 = vector.load %arg3[%c0_29, %c0_30] : memref<2x1xf32, #tpu.memory_space<vmem>>, vector<2x1xf32>
    %c0_31 = arith.constant 0 : index
    %c0_32 = arith.constant 0 : index
    %45 = vector.load %arg5[%c0_31, %c0_32] : memref<32x1xf32, #tpu.memory_space<vmem>>, vector<32x1xf32>
    %cst_33 = arith.constant dense<0.000000e+00> : vector<2x2xf32>
    %46 = tpu.matmul %42, %41, %cst_33 {dimension_numbers = #tpu.dot_dimension_numbers<[1], [0], [0], [1], [0, 0, 1, 1], [], []>} : vector<2x32xf32>, vector<32x2xf32>, vector<2x2xf32> -> vector<2x2xf32>
    %47 = vector.broadcast %44 : vector<2x1xf32> to vector<2x2xf32>
    %48 = arith.addf %46, %47 : vector<2x2xf32>
    %cst_34 = arith.constant 0.000000e+00 : f32
    %49 = vector.broadcast %cst_34 : f32 to vector<2x2xf32>
    %50 = arith.maximumf %48, %49 : vector<2x2xf32>
    %cst_35 = arith.constant dense<0.000000e+00> : vector<32x2xf32>
    %51 = tpu.matmul %43, %50, %cst_35 {dimension_numbers = #tpu.dot_dimension_numbers<[1], [0], [0], [1], [0, 0, 1, 1], [], []>} : vector<32x2xf32>, vector<2x2xf32>, vector<32x2xf32> -> vector<32x2xf32>
    %52 = vector.broadcast %45 : vector<32x1xf32> to vector<32x2xf32>
    %53 = arith.addf %51, %52 : vector<32x2xf32>
    %cst_36 = arith.constant dense<0.000000e+00> : vector<32xf32>
    %54 = vector.multi_reduction <add>, %53, %cst_36 [1] : vector<32x2xf32> to vector<32xf32>
    %55 = vector.shape_cast %54 : vector<32xf32> to vector<32x1xf32>
    %56 = arith.negf %55 : vector<32x1xf32>
    %57 = math.exp %56 : vector<32x1xf32>
    %cst_37 = arith.constant 1.000000e+00 : f32
    %58 = vector.broadcast %cst_37 : f32 to vector<32x1xf32>
    %59 = arith.addf %58, %57 : vector<32x1xf32>
    %60 = arith.divf %58, %59 : vector<32x1xf32>
    %61 = vector.broadcast %60 : vector<32x1xf32> to vector<32x256xf32>
    %62 = arith.mulf %34, %61 : vector<32x256xf32>
    %c1_38 = arith.constant 1 : index
    %c0_39 = arith.constant 0 : index
    %c0_40 = arith.constant 0 : index
    %63 = vector.load %arg6[%c1_38, %c0_39, %c0_40] : memref<2x32x256xf32, #tpu.memory_space<vmem>>, vector<1x32x256xf32>
    %64 = vector.shape_cast %63 : vector<1x32x256xf32> to vector<32x256xf32>
    %65 = vector.shape_cast %62 : vector<32x256xf32> to vector<1x32x256xf32>
    tpu.vector_store %arg6[%c1_38, %c0_39, %c0_40], %65 {strides = array<i32>} : memref<2x32x256xf32, #tpu.memory_space<vmem>>, vector<1x32x256xf32>,
    return
  }
  func.func @transform_0(%arg0: i32) -> (i32, i32, i32) {
    %c0_i32 = arith.constant 0 : i32
    %c0_i32_0 = arith.constant 0 : i32
    %c0_i32_1 = arith.constant 0 : i32
    return %arg0, %c0_i32, %c0_i32_0 : i32, i32, i32
  }
  func.func @transform_1(%arg0: i32) -> (i32, i32) {
    %c0_i32 = arith.constant 0 : i32
    %c0_i32_0 = arith.constant 0 : i32
    %c0_i32_1 = arith.constant 0 : i32
    return %c0_i32, %c0_i32_0 : i32, i32
  }
  func.func @transform_2(%arg0: i32) -> (i32, i32) {
    %c0_i32 = arith.constant 0 : i32
    %c0_i32_0 = arith.constant 0 : i32
    %c0_i32_1 = arith.constant 0 : i32
    return %c0_i32, %c0_i32_0 : i32, i32
  }
  func.func @transform_3(%arg0: i32) -> (i32, i32) {
    %c0_i32 = arith.constant 0 : i32
    %c0_i32_0 = arith.constant 0 : i32
    %c0_i32_1 = arith.constant 0 : i32
    return %c0_i32, %c0_i32_0 : i32, i32
  }
  func.func @transform_4(%arg0: i32) -> (i32, i32) {
    %c0_i32 = arith.constant 0 : i32
    %c0_i32_0 = arith.constant 0 : i32
    %c0_i32_1 = arith.constant 0 : i32
    return %c0_i32, %c0_i32_0 : i32, i32
  }
  func.func @transform_5(%arg0: i32) -> (i32, i32, i32) {
    %c0_i32 = arith.constant 0 : i32
    %c0_i32_0 = arith.constant 0 : i32
    %c0_i32_1 = arith.constant 0 : i32
    return %arg0, %c0_i32, %c0_i32_0 : i32, i32, i32
  }
}

</mosaic_0001>

<bundles_post_ra>
// kernel: tpu_custom_call.1
= control target key start
LH: loop header
LB: loop body
LE: loop exit
PB: predicated region body
PF: predicated region fallthrough
CT: control target
= control target key end

     0   :  { %10 = vsyncpa [#allocation3], 0  ;;  %s907_s0 = inlined_call_operand.hbm [shape: f32[2,32,256], index: 0, kind: input, shape index: {}]   ;;  %s908_s1 = inlined_call_operand.vmem [shape: f32[2,32], index: 1, kind: input, shape index: {}]   ;;  %s909_s2 = inlined_call_operand.vmem [shape: f32[2,1], index: 2, kind: input, shape index: {}]   ;;  %s910_s3 = inlined_call_operand.vmem [shape: f32[32,2], index: 3, kind: input, shape index: {}]   ;;  %s911_s4 = inlined_call_operand.vmem [shape: f32[32,1], index: 4, kind: input, shape index: {}]   ;;  %s912_s5 = inlined_call_operand.hbm [shape: f32[2,32,256], index: 5, kind: output, shape index: {}]  }
   0x1   :  { %11 = vsyncpa [#allocation4], 0  ;;  %s16_s20 = sshll.u32 %s907_s0, 4  ;;  %s670_s21 = smov [#allocation2]   ;;  %s17_s20 = int_to_ptr.hbm [resolvable:$true] %s16_s20 }
   0x2   :  { %s18_s22 = sshll.u32 %s670_s21, 4  ;;  %s671_s23 = smov 256   ;;  %s19_s22 = int_to_ptr.vmem [resolvable:$true] %s18_s22 }
   0x3   :  { %s672_s24 = smov 16  }
   0x4   :  { %24 = dma.hbm_to_vmem [thread:$0]  %s17_s20, 2048, %s19_s22, [#allocation3], %s671_s23, %s671_s23, %s672_s24  }
   0x5   :  { %666 = dma.done.wait [#allocation3], 2048  }
   0x6   :  { %667 = vsyncadd [#allocation3], 4294965248  ;;  %v711_v0 = vld [vmem:[#allocation2 + $0x70] sm:$0xff]  ;;  %v713_v1 = vld [vmem:[#allocation2 + $0x78] sm:$0xff]  ;;  %v673_v32 = vmov 0   ;;  %vm73_vm0 = vcmask 7168  }
   0x7   :  { %v715_v2 = vld [vmem:[#allocation2 + $0x60] sm:$0xff]  ;;  %v318_v3 = vmax.f32 %v711_v0, %v713_v1  ;;  %v306_v4 = vadd.f32 %v713_v1, %v711_v0  ;;  %v721_v5 = vld [vmem:[#allocation2 + $0x68] sm:$0xff]  ;;  %v725_v7 = vld [vmem:[#allocation2 + $0x50] sm:$0xff]  ;;  %583 = vset.pattern.permute.xlu1 %v673_v32  ;;  %584 = vset.pattern.permute.xlu2 %v673_v32  ;;  %vm93_vm1 = vcmask 261120   ;;  %vm151_vm2 = vcmask 1041408   ;;  %s543_s0 = sshll.u32 %s912_s5, 4  ;;  %s544_s0 = int_to_ptr.hbm [resolvable:$true] %s543_s0 }
   0x8   :  { %v315_v6 = vmax.f32 %v715_v2, %v721_v5  ;;  %v727_v8 = vld [vmem:[#allocation2 + $0x58] sm:$0xff]  ;;  %v729_v9 = vld [vmem:[#allocation2 + $0x40] sm:$0xff]  ;;  %v731_v10 = vld [vmem:[#allocation2 + $0x48] sm:$0xff]  ;;  %v303_v11 = vadd.f32 %v721_v5, %v715_v2  ;;  %585 = vset.pattern.permute.xlu0 %v673_v32  ;;  %vm138_vm3 = vcmask 15360  }
   0x9   :  { %319 = vmax.xlane.f32.xlu1 %v318_v3  ;;  %307 = vadd.xlane.f32.xlu0 %v306_v4  ;;  %v300_v12 = vadd.f32 %v727_v8, %v725_v7  ;;  %v297_v13 = vadd.f32 %v731_v10, %v729_v9  ;;  %v739_v14 = vld [vmem:[#allocation2 + $0x30] sm:$0xff]  ;;  %v741_v15 = vld [vmem:[#allocation2 + $0x38] sm:$0xff]  ;;  %v312_v16 = vmax.f32 %v725_v7, %v727_v8  ;;  %v749_v19 = vld [vmem:[#allocation2 + $0x20] sm:$0xff] }
   0xa   :  { %316 = vmax.xlane.f32.xlu2 %v315_v6  ;;  %v309_v17 = vmax.f32 %v729_v9, %v731_v10  ;;  %v54_v18 = vadd.f32 %v741_v15, %v739_v14  ;;  %v751_v20 = vld [vmem:[#allocation2 + $0x28] sm:$0xff]  ;;  %v753_v21 = vld [vmem:[#allocation2 + $0x10] sm:$0xff]  ;;  %v755_v22 = vld [vmem:[#allocation2 + $0x18] sm:$0xff]  ;;  %v66_v23 = vmax.f32 %v739_v14, %v741_v15 }
   0xb   :  { %v51_v24 = vadd.f32 %v751_v20, %v749_v19  ;;  %v48_v25 = vadd.f32 %v755_v22, %v753_v21  ;;  %v763_v26 = vld [vmem:[#allocation2] sm:$0xff]  ;;  %v765_v27 = vld [vmem:[#allocation2 + $0x8] sm:$0xff]  ;;  %v63_v28 = vmax.f32 %v749_v19, %v751_v20  ;;  %v60_v30 = vmax.f32 %v753_v21, %v755_v22  ;;  %v86_v41 = vld [vmem:[%s911_s4 + $0x10] sm:$0xff] }
   0xc   :  { %v45_v29 = vadd.f32 %v765_v27, %v763_v26  ;;  %v57_v31 = vmax.f32 %v763_v26, %v765_v27  ;;  %v334_v35 = vld [vmem:[%s909_s2] sm:$0x3]  ;;  %v85_v53 = vld [vmem:[%s911_s4 + $0x8] sm:$0xff]  ;;  %v87_v56 = vld [vmem:[%s911_s4 + $0x18] sm:$0xff] }
   0xd   :  { %v83_v45 = vld [vmem:[%s909_s2] sm:$0x3] }
   0xe   :  { %v335_v46 = vld [vmem:[%s911_s4] sm:$0xff] }
   0xf   :  { %v329_v54 = vld [vmem:[%s908_s1] sm:$0x3] }
  0x11   :  { %304 = vadd.xlane.f32.xlu0 %v303_v11  ;;  %301 = vadd.xlane.f32.xlu1 %v300_v12 }
  0x12   :  { %298 = vadd.xlane.f32.xlu2 %v297_v13 }
  0x19   :  { %313 = vmax.xlane.f32.xlu0 %v312_v16  ;;  %310 = vmax.xlane.f32.xlu1 %v309_v17  ;;  %v78_v17 = vld [vmem:[%s908_s1] sm:$0x3] }
  0x1a   :  { %55 = vadd.xlane.f32.xlu2 %v54_v18 }
  0x21   :  { %67 = vmax.xlane.f32.xlu1 %v66_v23  ;;  %52 = vadd.xlane.f32.xlu0 %v51_v24 }
  0x22   :  { %49 = vadd.xlane.f32.xlu2 %v48_v25 }
  0x29   :  { %64 = vmax.xlane.f32.xlu0 %v63_v28  ;;  %46 = vadd.xlane.f32.xlu1 %v45_v29  ;;  %v330_v29 = vld [vmem:[%s910_s3] sm:$0xff] }
  0x2a   :  { %61 = vmax.xlane.f32.xlu2 %v60_v30  ;;  %v331_v30 = vld [vmem:[%s910_s3 + $0x8] sm:$0xff] }
  0x31   :  { %58 = vmax.xlane.f32.xlu0 %v57_v31  ;;  %v332_v31 = vld [vmem:[%s910_s3 + $0x10] sm:$0xff] }
  0x42   :  { %341 = vperm.xlu1 %583, %v334_v35   ;;  %90 = vperm.xlu2 %584, %v83_v45  }
  0x45   :  { %120 = vperm.xlu0 %585, %v335_v46  }
  0x4a   :  { %130 = vperm.xlu1 %583, %v86_v41   ;;  %125 = vperm.xlu2 %584, %v85_v53  }
  0x4d   :  { %385 = vperm.xlu0 %585, %v87_v56  }
  0x52   :  { %370 = vperm.xlu1 %583, %v335_v46   ;;  %135 = vperm.xlu2 %584, %v87_v56  }
  0x5a   :  { %380 = vperm.xlu1 %583, %v86_v41   ;;  %375 = vperm.xlu2 %584, %v85_v53  }
  0x7c   :  { %v320_v33 = vpop.xlane.xlu1 %319  ;;  %v308_v34 = vpop.xlane.xlu0 %307 }
  0x7d   :  { %v324_v36 = vmul.f32 0.00390625, %v308_v34  ;;  %v317_v37 = vpop.xlane.xlu2 %316 }
  0x7f   :  { %v328_v38 = vsel %vm73_vm0, %v324_v36, %v320_v33  ;;  %v333_v36 = vld [vmem:[%s910_s3 + $0x18] sm:$0xff]  ;;  %s674_s3 = smov [#allocation5]  }
  0x80   :  { %359 = vmatpush.msra.mxu2 %v328_v38  ;;  %s541_s20 = sshll.u32 %s674_s3, 4  ;;  %s542_s20 = int_to_ptr.vmem [resolvable:$true] %s541_s20 }
  0x84   :  { %v305_v39 = vpop.xlane.xlu0 %304  ;;  %v302_v40 = vpop.xlane.xlu1 %301 }
  0x85   :  { %v323_v42 = vmul.f32 0.00390625, %v305_v39  ;;  %v299_v43 = vpop.xlane.xlu2 %298  ;;  %v322_v47 = vmul.f32 0.00390625, %v302_v40 }
  0x86   :  { %v321_v48 = vmul.f32 0.00390625, %v299_v43 }
  0x87   :  { %v327_v44 = vsel %vm73_vm0, %v323_v42, %v317_v37 }
  0x88   :  { %360 = vmatpush.msra.mxu2 %v327_v44 }
  0x8c   :  { %v314_v49 = vpop.xlane.xlu0 %313  ;;  %v311_v50 = vpop.xlane.xlu1 %310 }
  0x8d   :  { %v56_v51 = vpop.xlane.xlu2 %55  ;;  %v326_v52 = vsel %vm73_vm0, %v322_v47, %v314_v49  ;;  %v325_v55 = vsel %vm73_vm0, %v321_v48, %v311_v50 }
  0x8e   :  { %361 = vmatpush.msra.mxu2 %v326_v52  ;;  %v72_v57 = vmul.f32 0.00390625, %v56_v51 }
  0x90   :  { %362 = vmatpush.msra.mxu2 %v325_v55 }
  0x91   :  { %566 = vmatmul.msk.f32.vlgmr.msra.gmra.mxu2 %vm93_vm1, %v329_v54 }
  0x94   :  { %v68_v58 = vpop.xlane.xlu1 %67  ;;  %v53_v59 = vpop.xlane.xlu0 %52 }
  0x95   :  { %v50_v60 = vpop.xlane.xlu2 %49  ;;  %v77_v61 = vsel %vm73_vm0, %v72_v57, %v68_v58  ;;  %v71_v62 = vmul.f32 0.00390625, %v53_v59 }
  0x96   :  { %109 = vmatpush.msra.mxu0 %v77_v61  ;;  %v70_v63 = vmul.f32 0.00390625, %v50_v60 }
  0x9c   :  { %v65_v3 = vpop.xlane.xlu0 %64  ;;  %v47_v11 = vpop.xlane.xlu1 %46 }
  0x9d   :  { %v62_v4 = vpop.xlane.xlu2 %61  ;;  %v76_v6 = vsel %vm73_vm0, %v71_v62, %v65_v3  ;;  %v69_v13 = vmul.f32 0.00390625, %v47_v11 }
  0x9e   :  { %110 = vmatpush.msra.mxu0 %v76_v6  ;;  %v75_v12 = vsel %vm73_vm0, %v70_v63, %v62_v4 }
  0xa0   :  { %111 = vmatpush.msra.mxu0 %v75_v12 }
  0xa4   :  { %v59_v16 = vpop.xlane.xlu0 %58 }
  0xa5   :  { %v74_v18 = vsel %vm73_vm0, %v69_v13, %v59_v16  ;;  %v91_v32 = vpop.permute.xlu2 %90 }
  0xa6   :  { %112 = vmatpush.msra.mxu0 %v74_v18 }
  0xa7   :  { %556 = vmatmul.msk.f32.vlgmr.msra.gmra.mxu0 %vm93_vm1, %v78_v17 }
  0xad   :  { %v126_v40 = vpop.permute.xlu2 %125 }
  0xb4   :  { %v342_v23 = vpop.permute.xlu1 %341 }
  0xb5   :  { %v136_v53 = vpop.permute.xlu2 %135 }
  0xb7   :  { %v121_v39 = vpop.permute.xlu0 %120 }
  0xbc   :  { %v131_v38 = vpop.permute.xlu1 %130 }
  0xbd   :  { %v376_v6 = vpop.permute.xlu2 %375 }
  0xbf   :  { %v386_v56 = vpop.permute.xlu0 %385 }
  0xc4   :  { %v371_v49 = vpop.permute.xlu1 %370 }
  0xcc   :  { %v381_v58 = vpop.permute.xlu1 %380 }
 0x114   :  { %v364_v24 = vpop.f32.mrf.mxu2 }
 0x115   :  { %v365_v25 = vadd.f32 %v364_v24, %v342_v23 }
 0x117   :  { %v367_v28 = vmax.f32 %v365_v25, 0.0 }
 0x119   :  { %567 = vmatpush.msk.msrb.mxu2 %vm151_vm2, %v367_v28  ;;  %577 = vmatpush.msk.msra.mxu3 %vm151_vm2, %v367_v28 }
 0x11a   :  { %568 = vmatmul.msk.f32.vlgmr.msrb.gmra.mxu2 %vm138_vm3, %v330_v29  ;;  %569 = vmatmul.msk.f32.vlgmr.msra.gmra.mxu3 %vm138_vm3, %v331_v30 }
 0x122   :  { %570 = vmatmul.msk.f32.gmra.mxu3 %vm138_vm3, %v332_v31 }
 0x124   :  { %v114_v33 = vpop.f32.mrf.mxu0 }
 0x125   :  { %v115_v34 = vadd.f32 %v114_v33, %v91_v32 }
 0x127   :  { %v117_v35 = vmax.f32 %v115_v34, 0.0 }
 0x129   :  { %557 = vmatpush.msk.msrb.mxu0 %vm151_vm2, %v117_v35  ;;  %576 = vmatpush.msk.msra.mxu1 %vm151_vm2, %v117_v35 }
 0x12a   :  { %558 = vmatmul.msk.f32.vlgmr.msrb.gmra.mxu0 %vm138_vm3, %v330_v29  ;;  %559 = vmatmul.msk.f32.vlgmr.msra.gmra.mxu1 %vm138_vm3, %v331_v30 }
 0x12b   :  { %571 = vmatmul.msk.f32.gmra.mxu3 %vm138_vm3, %v333_v36 }
 0x132   :  { %560 = vmatmul.msk.f32.gmra.mxu1 %vm138_vm3, %v332_v31 }
 0x13a   :  { %561 = vmatmul.msk.f32.gmra.mxu1 %vm138_vm3, %v333_v36 }
 0x19d   :  { %v423_v37 = vpop.f32.mrf.mxu3  ;;  %v420_v47 = vpop.f32.mrf.mxu2 }
 0x19e   :  { %v421_v50 = vadd.f32 %v420_v47, %v371_v49  ;;  %v424_v11 = vadd.f32 %v423_v37, %v376_v6 }
 0x1a0   :  { %v432_v55 = vsel %vm138_vm3, %v421_v50, 0.0  ;;  %v435_v12 = vsel %vm138_vm3, %v424_v11, 0.0 }
 0x1a5   :  { %v426_v48 = vpop.f32.mrf.mxu3 }
 0x1a6   :  { %v427_v60 = vadd.f32 %v426_v48, %v381_v58 }
 0x1a7   :  { %v172_v41 = vpop.f32.mrf.mxu0  ;;  %v175_v42 = vpop.f32.mrf.mxu1 }
 0x1a8   :  { %v173_v43 = vadd.f32 %v172_v41, %v121_v39  ;;  %v176_v44 = vadd.f32 %v175_v42, %v126_v40  ;;  %v438_v4 = vsel %vm138_vm3, %v427_v60, 0.0 }
 0x1aa   :  { %v187_v45 = vsel %vm138_vm3, %v176_v44, 0.0  ;;  %v184_v46 = vsel %vm138_vm3, %v173_v43, 0.0 }
 0x1ab   :  { %188 = vadd.xlane.f32.xlu1 %v187_v45  ;;  %185 = vadd.xlane.f32.xlu2 %v184_v46 }
 0x1ae   :  { %v429_v57 = vpop.f32.mrf.mxu3 }
 0x1af   :  { %v178_v51 = vpop.f32.mrf.mxu1  ;;  %v430_v59 = vadd.f32 %v429_v57, %v386_v56 }
 0x1b0   :  { %v179_v52 = vadd.f32 %v178_v51, %v131_v38 }
 0x1b1   :  { %v441_v3 = vsel %vm138_vm3, %v430_v59, 0.0 }
 0x1b2   :  { %v190_v54 = vsel %vm138_vm3, %v179_v52, 0.0 }
 0x1b3   :  { %191 = vadd.xlane.f32.xlu0 %v190_v54  ;;  %433 = vadd.xlane.f32.xlu1 %v432_v55 }
 0x1b7   :  { %v181_v61 = vpop.f32.mrf.mxu1 }
 0x1b8   :  { %v182_v62 = vadd.f32 %v181_v61, %v136_v53 }
 0x1ba   :  { %v193_v63 = vsel %vm138_vm3, %v182_v62, 0.0 }
 0x1bb   :  { %194 = vadd.xlane.f32.xlu2 %v193_v63  ;;  %442 = vadd.xlane.f32.xlu1 %v441_v3 }
 0x1bc   :  { %439 = vadd.xlane.f32.xlu0 %v438_v4 }
 0x1c3   :  { %436 = vadd.xlane.f32.xlu2 %v435_v12 }
 0x21e   :  { %v186_v13 = vpop.xlane.xlu2 %185  ;;  %v189_v16 = vpop.xlane.xlu1 %188 }
 0x21f   :  { %v562_v17 = vmul.f32 -1.442695, %v186_v13  ;;  %v563_v18 = vmul.f32 -1.442695, %v189_v16 }
 0x221   :  { %586 = vpow2.f32 %v562_v17 }
 0x222   :  { %588 = vpow2.f32 %v563_v18 }
 0x226   :  { %v192_v23 = vpop.xlane.xlu0 %191  ;;  %v434_v24 = vpop.xlane.xlu1 %433 }
 0x227   :  { %v587_v25 = vpop.eup %586  ;;  %v564_v28 = vmul.f32 -1.442695, %v192_v23  ;;  %v572_v31 = vmul.f32 -1.442695, %v434_v24 }
 0x228   :  { %v589_v29 = vpop.eup %588  ;;  %v208_v30 = vadd.f32 1.0, %v587_v25 }
 0x229   :  { %v209_v32 = vadd.f32 1.0, %v589_v29  ;;  %590 = vpow2.f32 %v564_v28 }
 0x22a   :  { %592 = vrcp.f32 %v208_v30  ;;  %vm217_vm4 = vweird.f32 %v208_v30  ;;  %v221_v48 = vand.u32 2147483647, %v208_v30  ;;  %v223_v49 = vand.u32 2147483648, %v208_v30 }
 0x22b   :  { %594 = vrcp.f32 %v209_v32  ;;  %v238_v52 = vand.u32 2147483648, %v209_v32  ;;  %v236_v54 = vand.u32 2147483647, %v209_v32  ;;  %vm232_vm7 = vweird.f32 %v209_v32 }
 0x22c   :  { %596 = vpow2.f32 %v572_v31  ;;  %vm222_vm9 = vcmp.eq.f32.partialorder %v221_v48, 8.507059e+37  ;;  %v224_v60 = vor.u32 1.1754944e-38, %v223_v49 }
 0x22d   :  { %v239_v3 = vor.u32 1.1754944e-38, %v238_v52  ;;  %vm237_vm11 = vcmp.eq.f32.partialorder %v236_v54, 8.507059e+37 }
 0x22e   :  { %v195_v33 = vpop.xlane.xlu2 %194  ;;  %v443_v40 = vpop.xlane.xlu1 %442 }
 0x22f   :  { %v591_v34 = vpop.eup %590  ;;  %v565_v35 = vmul.f32 -1.442695, %v195_v33  ;;  %v440_v36 = vpop.xlane.xlu0 %439  ;;  %v575_v47 = vmul.f32 -1.442695, %v443_v40 }
 0x230   :  { %v593_v37 = vpop.eup %592  ;;  %v841_v38 = vadd.f32 1.0, %v591_v34  ;;  %v574_v39 = vmul.f32 -1.442695, %v440_v36 }
 0x231   :  { %v595_v41 = vpop.eup %594  ;;  %v213_v42 = vmul.f32 %v593_v37, %v208_v30  ;;  %598 = vpow2.f32 %v565_v35  ;;  %vm218_vm5 = vweird.f32 %v593_v37 }
 0x232   :  { %v597_v43 = vpop.eup %596  ;;  %v228_v44 = vmul.f32 %v595_v41, %v209_v32  ;;  %600 = vrcp.f32 %v841_v38  ;;  %vm233_vm6 = vweird.f32 %v595_v41  ;;  %vm219_vm8 = vmor %vm217_vm4, %vm218_vm5  ;;  %v253_v28 = vand.u32 2147483648, %v841_v38 }
 0x233   :  { %v214_v45 = vsub.f32 1.0, %v213_v42  ;;  %v844_v46 = vadd.f32 1.0, %v597_v43  ;;  %602 = vpow2.f32 %v574_v39  ;;  %vm234_vm10 = vmor %vm232_vm7, %vm233_vm6  ;;  %v251_v32 = vand.u32 2147483647, %v841_v38 }
 0x234   :  { %v229_v50 = vsub.f32 1.0, %v228_v44  ;;  %vm247_vm13 = vweird.f32 %v841_v38  ;;  %v254_v36 = vor.u32 1.1754944e-38, %v253_v28 }
 0x235   :  { %v215_v51 = vmul.f32 %v593_v37, %v214_v45  ;;  %604 = vrcp.f32 %v844_v46  ;;  %v469_v39 = vand.u32 2147483647, %v844_v46  ;;  %vm252_vm0 = vcmp.eq.f32.partialorder %v251_v32, 8.507059e+37 }
 0x236   :  { %v230_v53 = vmul.f32 %v595_v41, %v229_v50  ;;  %v437_v55 = vpop.xlane.xlu2 %436  ;;  %606 = vpow2.f32 %v575_v47  ;;  %vm465_vm1 = vweird.f32 %v844_v46 }
 0x237   :  { %v599_v56 = vpop.eup %598  ;;  %v216_v57 = vadd.f32 %v593_v37, %v215_v51  ;;  %v573_v58 = vmul.f32 -1.442695, %v437_v55  ;;  %vm470_vm3 = vcmp.eq.f32.partialorder %v469_v39, 8.507059e+37 }
 0x238   :  { %v601_v59 = vpop.eup %600  ;;  %v231_v61 = vadd.f32 %v595_v41, %v230_v53  ;;  %v848_v62 = vadd.f32 1.0, %v599_v56 }
 0x239   :  { %v220_v63 = vsel %vm219_vm8, %v593_v37, %v216_v57  ;;  %v243_v4 = vmul.f32 %v601_v59, %v841_v38  ;;  %608 = vpow2.f32 %v573_v58  ;;  %v603_v6 = vpop.eup %602  ;;  %vm248_vm12 = vweird.f32 %v601_v59 }
 0x23a   :  { %v225_v11 = vsel %vm222_vm9, %v224_v60, %v220_v63  ;;  %v235_v12 = vsel %vm234_vm10, %v595_v41, %v231_v61  ;;  %610 = vrcp.f32 %v848_v62  ;;  %v860_v33 = vadd.f32 1.0, %v603_v6  ;;  %vm249_vm14 = vmor %vm247_vm13, %vm248_vm12 }
 0x23b   :  { %v605_v13 = vpop.eup %604  ;;  %v272_v16 = vmul.f32 %v225_v11, %v763_v26  ;;  %v273_v17 = vmul.f32 %v225_v11, %v765_v27  ;;  %v240_v18 = vsel %vm237_vm11, %v239_v3, %v235_v12  ;;  %v244_v23 = vsub.f32 1.0, %v243_v4 }
 0x23c   :  { %v274_v24 = vmul.f32 %v240_v18, %v753_v21  ;;  %v275_v25 = vmul.f32 %v240_v18, %v755_v22  ;;  %v461_v29 = vmul.f32 %v605_v13, %v844_v46  ;;  %v607_v30 = vpop.eup %606  ;;  %v471_v22 = vand.u32 2147483648, %v844_v46 }
 0x23d   :  { %280 = vst [vmem:[#allocation5] sm:$0xff] %v272_v16  ;;  %v245_v31 = vmul.f32 %v601_v59, %v244_v23  ;;  %v862_v27 = vadd.f32 1.0, %v607_v30  ;;  %612 = vrcp.f32 %v860_v33  ;;  %vm466_vm15 = vweird.f32 %v605_v13 }
 0x23e   :  { %281 = vst [vmem:[#allocation5 + $0x8] sm:$0xff] %v273_v17  ;;  %v462_v26 = vsub.f32 1.0, %v461_v29  ;;  %vm467_vm2 = vmor %vm465_vm1, %vm466_vm15  ;;  %v472_v45 = vor.u32 1.1754944e-38, %v471_v22  ;;  %v268_v49 = vand.u32 2147483648, %v848_v62  ;;  %v266_v46 = vand.u32 2147483647, %v848_v62 }
 0x23f   :  { %v609_v34 = vpop.eup %608  ;;  %282 = vst [vmem:[#allocation5 + $0x10] sm:$0xff] %v274_v24  ;;  %v246_v21 = vadd.f32 %v601_v59, %v245_v31  ;;  %614 = vrcp.f32 %v862_v27  ;;  %vm262_vm5 = vweird.f32 %v848_v62  ;;  %v514_v6 = vand.u32 2147483647, %v862_v27 }
 0x240   :  { %v611_v35 = vpop.eup %610  ;;  %283 = vst [vmem:[#allocation5 + $0x18] sm:$0xff] %v275_v25  ;;  %v463_v37 = vmul.f32 %v605_v13, %v462_v26  ;;  %v874_v50 = vadd.f32 1.0, %v609_v34  ;;  %v269_v57 = vor.u32 1.1754944e-38, %v268_v49  ;;  %vm267_vm7 = vcmp.eq.f32.partialorder %v266_v46, 8.507059e+37 }
 0x241   :  { %v250_v40 = vsel %vm249_vm14, %v601_v59, %v246_v21  ;;  %v258_v41 = vmul.f32 %v611_v35, %v848_v62  ;;  %vm263_vm4 = vweird.f32 %v611_v35  ;;  %v516_v11 = vand.u32 2147483648, %v862_v27 }
 0x242   :  { %v255_v42 = vsel %vm252_vm0, %v254_v36, %v250_v40  ;;  %v464_v38 = vadd.f32 %v605_v13, %v463_v37  ;;  %616 = vrcp.f32 %v874_v50  ;;  %vm264_vm6 = vmor %vm262_vm5, %vm263_vm4  ;;  %vm495_vm9 = vweird.f32 %v860_v33 }
 0x243   :  { %v276_v43 = vmul.f32 %v255_v42, %v749_v19  ;;  %v277_v44 = vmul.f32 %v255_v42, %v751_v20  ;;  %v259_v47 = vsub.f32 1.0, %v258_v41  ;;  %v613_v51 = vpop.eup %612  ;;  %vm510_vm13 = vweird.f32 %v862_v27 }
 0x244   :  { %v468_v48 = vsel %vm467_vm2, %v605_v13, %v464_v38  ;;  %v491_v54 = vmul.f32 %v613_v51, %v860_v33  ;;  %vm496_vm8 = vweird.f32 %v613_v51  ;;  %vm515_vm15 = vcmp.eq.f32.partialorder %v514_v6, 8.507059e+37 }
 0x245   :  { %284 = vst [vmem:[#allocation5 + $0x20] sm:$0xff] %v276_v43  ;;  %v473_v52 = vsel %vm470_vm3, %v472_v45, %v468_v48  ;;  %v260_v53 = vmul.f32 %v611_v35, %v259_v47  ;;  %v615_v55 = vpop.eup %614  ;;  %vm497_vm11 = vmor %vm495_vm9, %vm496_vm8  ;;  %v517_v24 = vor.u32 1.1754944e-38, %v516_v11  ;;  %v484_v32 = vand.u32 2147483647, %v874_v50 }
 0x246   :  { %285 = vst [vmem:[#allocation5 + $0x28] sm:$0xff] %v277_v44  ;;  %v520_v19 = vmul.f32 %v473_v52, %v729_v9  ;;  %v521_v20 = vmul.f32 %v473_v52, %v731_v10  ;;  %v492_v58 = vsub.f32 1.0, %v491_v54  ;;  %v506_v59 = vmul.f32 %v615_v55, %v862_v27 }
 0x247   :  { %v261_v56 = vadd.f32 %v611_v35, %v260_v53  ;;  %v499_v9 = vand.u32 2147483647, %v860_v33  ;;  %v501_v10 = vand.u32 2147483648, %v860_v33  ;;  %vm511_vm10 = vweird.f32 %v615_v55 }
 0x248   :  { %529 = vst [vmem:[#allocation5 + $0x40] sm:$0xff] %v520_v19  ;;  %v493_v63 = vmul.f32 %v613_v51, %v492_v58  ;;  %v507_v3 = vsub.f32 1.0, %v506_v59  ;;  %v617_v16 = vpop.eup %616  ;;  %vm512_vm14 = vmor %vm510_vm13, %vm511_vm10  ;;  %v486_v33 = vand.u32 2147483648, %v874_v50  ;;  %vm480_vm1 = vweird.f32 %v874_v50 }
 0x249   :  { %530 = vst [vmem:[#allocation5 + $0x48] sm:$0xff] %v521_v20  ;;  %v265_v60 = vsel %vm264_vm6, %v611_v35, %v261_v56  ;;  %vm500_vm12 = vcmp.eq.f32.partialorder %v499_v9, 8.507059e+37  ;;  %v502_v17 = vor.u32 1.1754944e-38, %v501_v10  ;;  %vm481_vm0 = vweird.f32 %v617_v16 }
 0x24a   :  { %v270_v61 = vsel %vm267_vm7, %v269_v57, %v265_v60  ;;  %v494_v12 = vadd.f32 %v613_v51, %v493_v63  ;;  %v508_v13 = vmul.f32 %v615_v55, %v507_v3  ;;  %vm482_vm2 = vmor %vm480_vm1, %vm481_vm0  ;;  %vm485_vm3 = vcmp.eq.f32.partialorder %v484_v32, 8.507059e+37 }
 0x24b   :  { %v278_v62 = vmul.f32 %v270_v61, %v739_v14  ;;  %v279_v4 = vmul.f32 %v270_v61, %v741_v15  ;;  %v476_v14 = vmul.f32 %v617_v16, %v874_v50 }
 0x24c   :  { %v498_v18 = vsel %vm497_vm11, %v613_v51, %v494_v12  ;;  %v509_v23 = vadd.f32 %v615_v55, %v508_v13 }
 0x24d   :  { %286 = vst [vmem:[#allocation5 + $0x30] sm:$0xff] %v278_v62  ;;  %v503_v15 = vsel %vm500_vm12, %v502_v17, %v498_v18  ;;  %v477_v30 = vsub.f32 1.0, %v476_v14 }
 0x24e   :  { %287 = vst [vmem:[#allocation5 + $0x38] sm:$0xff] %v279_v4  ;;  %v524_v25 = vmul.f32 %v503_v15, %v715_v2  ;;  %v525_v28 = vmul.f32 %v503_v15, %v721_v5  ;;  %v513_v29 = vsel %vm512_vm14, %v615_v55, %v509_v23  ;;  %v487_v2 = vor.u32 1.1754944e-38, %v486_v33 }
 0x24f   :  { %v518_v31 = vsel %vm515_vm15, %v517_v24, %v513_v29  ;;  %v478_v34 = vmul.f32 %v617_v16, %v477_v30 }
 0x250   :  { %533 = vst [vmem:[#allocation5 + $0x60] sm:$0xff] %v524_v25  ;;  %v526_v26 = vmul.f32 %v518_v31, %v711_v0  ;;  %v527_v27 = vmul.f32 %v518_v31, %v713_v1 }
 0x251   :  { %534 = vst [vmem:[#allocation5 + $0x68] sm:$0xff] %v525_v28  ;;  %v479_v21 = vadd.f32 %v617_v16, %v478_v34 }
 0x252   :  { %535 = vst [vmem:[#allocation5 + $0x70] sm:$0xff] %v526_v26 }
 0x253   :  { %536 = vst [vmem:[#allocation5 + $0x78] sm:$0xff] %v527_v27  ;;  %v483_v5 = vsel %vm482_vm2, %v617_v16, %v479_v21 }
 0x254   :  { %v488_v0 = vsel %vm485_vm3, %v487_v2, %v483_v5 }
 0x255   :  { %v522_v1 = vmul.f32 %v488_v0, %v725_v7  ;;  %v523_v22 = vmul.f32 %v488_v0, %v727_v8 }
 0x257   :  { %531 = vst [vmem:[#allocation5 + $0x50] sm:$0xff] %v522_v1 }
 0x258   :  { %532 = vst [vmem:[#allocation5 + $0x58] sm:$0xff] %v523_v22 }
 0x259   :  { %549 = dma.vmem_to_hbm [thread:$0]  %s542_s20, 2048, %s544_s0, [#allocation4], %s671_s23, %s671_s23, %s672_s24  }
 0x25a   :  { %668 = dma.done.wait [#allocation4], 2048  }
 0x25b   :  { %669 = vsyncadd [#allocation4], 4294965248 }
 0x25c   :  { %554 = vsyncpa [#allocation3], 1 }
 0x25d   :  { %555 = vsyncpa [#allocation4], 1 }

</bundles_post_ra>
